<compile_context>
chip_gen: v7x
topology: tpu7x:2x2x1
jax: 0.10.0
libtpu: 0.0.40
codegen_flags: <defaults>
</compile_context>

<pallas_src>
import jax
import jax.numpy as jnp
import numpy as np
from jax.experimental import pallas as pl
from jax.experimental.pallas import tpu as pltpu


def lstm_fc_kernel(x_ref, wih_ref, whh_ref, b_ref, wfc_ref, bfc_ref, out_ref):
    # x_ref is time-major: (T, B, D).
    T, B, D = x_ref.shape
    H = whh_ref.shape[0]

    # ---- One-shot input projection for ALL timesteps (off the serial chain).
    # (T*B, D) @ (D, 4H) + b -> (T*B, 4H); rows [t*B, (t+1)*B) belong to step t.
    # Kept in f32: it runs once, so accuracy is free here.
    x_flat = x_ref[...].reshape(T * B, D)
    pre_in = (jnp.dot(x_flat, wih_ref[...], preferred_element_type=jnp.float32)
              + b_ref[...])                                   # bias folded, one broadcast

    # Recurrent weight resident in vregs; bf16 operand => single-pass MXU on
    # v6e/v7x (f32 matmuls are emulated there and sit on the critical path).
    whh_bf = whh_ref[...].astype(jnp.bfloat16)                # (H, 4H)

    # Recurrent state stays in vregs (loop carries, not VMEM scratch).
    h = jnp.zeros((B, H), jnp.float32)
    c = jnp.zeros((B, H), jnp.float32)

    # Fully unrolled recurrence (T is small and static): per step the only MXU
    # op that depends on h is h @ whh; the pre_in slice is static, contiguous
    # and sublane-aligned (B = 8 rows = one vreg sublane group).
    for t in range(T):
        pre = pre_in[t * B:(t + 1) * B, :] + jnp.dot(
            h.astype(jnp.bfloat16), whh_bf,
            preferred_element_type=jnp.float32)               # (B, 4H)
        # Two full-width EUP passes instead of four per-gate sliced ones.
        sig = jax.nn.sigmoid(pre)
        tnh = jnp.tanh(pre)
        i_g = sig[:, 0 * H:1 * H]
        f_g = sig[:, 1 * H:2 * H]
        g_g = tnh[:, 2 * H:3 * H]
        o_g = sig[:, 3 * H:4 * H]
        c = f_g * c + i_g * g_g
        h = o_g * jnp.tanh(c)

    # FC head on the final hidden state (runs exactly once; the narrow O=2
    # masked store is off the critical path — intentionally not padded).
    out_ref[...] = (jnp.dot(h, wfc_ref[...], preferred_element_type=jnp.float32)
                    + bfc_ref[...]).astype(out_ref.dtype)


def sentiment_rnn_forward(x, params):
    """x: (B, T, D) float32 (batch_first, like PyTorch). Returns (B, output_dim)."""
    wih, whh, b, wfc, bfc = params
    B, T, D = x.shape
    O = wfc.shape[1]

    # One-time, tiny (8 KiB) layout pass: feed the kernel time-major so the
    # precomputed projection is consumed as contiguous per-step row blocks.
    x_tm = jnp.transpose(x, (1, 0, 2))                        # (T, B, D)

    vmem_spec = pl.BlockSpec(memory_space=pltpu.MemorySpace.VMEM)
    return pl.pallas_call(
        lstm_fc_kernel,
        out_shape=jax.ShapeDtypeStruct((B, O), jnp.float32),
        # Single invocation (no grid): every operand is resident in VMEM.
        in_specs=[vmem_spec] * 6,
        out_specs=vmem_spec,
    )(x_tm, wih, whh, b, wfc, bfc)


def init_params(key, input_dim, hidden_dim, output_dim):
    """Deterministic init mirroring PyTorch shapes; repacked for the kernel."""
    ks = jax.random.split(key, 6)
    k = 1.0 / np.sqrt(hidden_dim)
    # PyTorch LSTM weights: weight_ih (4H, D), weight_hh (4H, H), gate order i,f,g,o.
    w_ih = jax.random.uniform(ks[0], (4 * hidden_dim, input_dim), jnp.float32, -k, k)
    w_hh = jax.random.uniform(ks[1], (4 * hidden_dim, hidden_dim), jnp.float32, -k, k)
    b_ih = jax.random.uniform(ks[2], (4 * hidden_dim,), jnp.float32, -k, k)
    b_hh = jax.random.uniform(ks[3], (4 * hidden_dim,), jnp.float32, -k, k)
    # Linear: (output_dim, hidden_dim), bias (output_dim,)
    w_fc = jax.random.uniform(ks[4], (output_dim, hidden_dim), jnp.float32, -k, k)
    b_fc = jax.random.uniform(ks[5], (output_dim,), jnp.float32, -k, k)

    # Lane-dense packing for the kernel:
    #   W_ih: (4H, D) -> (D, 4H); column blocks [0:H, H:2H, 2H:3H, 3H:4H] = i,f,g,o
    #   W_hh: (4H, H) -> (H, 4H)
    #   bias: b_ih + b_hh -> (1, 4H)
    wih_p = w_ih.T                                        # (D, 4H)
    whh_p = w_hh.T                                        # (H, 4H)
    b_p = (b_ih + b_hh).reshape(1, 4 * hidden_dim)        # (1, 4H)
    wfc_p = w_fc.T                                        # (H, O)
    bfc_p = b_fc.reshape(1, output_dim)                   # (1, O)
    return wih_p, whh_p, b_p, wfc_p, bfc_p


def reference_forward(x, params):
    """Pure-JAX f32 reference of the PyTorch SentimentRNN forward (packed params)."""
    wih, whh, b, wfc, bfc = params
    B, T, D = x.shape
    H = whh.shape[0]

    def step(carry, x_t):
        h, c = carry
        pre = x_t @ wih + h @ whh + b
        i_g = jax.nn.sigmoid(pre[:, 0 * H:1 * H])
        f_g = jax.nn.sigmoid(pre[:, 1 * H:2 * H])
        g_g = jnp.tanh(pre[:, 2 * H:3 * H])
        o_g = jax.nn.sigmoid(pre[:, 3 * H:4 * H])
        c = f_g * c + i_g * g_g
        h = o_g * jnp.tanh(c)
        return (h, c), None

    h0 = jnp.zeros((B, H), jnp.float32)
    c0 = jnp.zeros((B, H), jnp.float32)
    (hT, _), _ = jax.lax.scan(step, (h0, c0), jnp.transpose(x, (1, 0, 2)))
    return hT @ wfc + bfc


if __name__ == "__main__":
    # Small shapes consistent with the module: (batch, seq, input_dim), hidden, classes.
    # H = 32 => 4H = 128 so the fused gate pre-activation is exactly lane-dense.
    B, T, D, H, O = 8, 8, 32, 32, 2

    key = jax.random.PRNGKey(0)
    k_x, k_p = jax.random.split(key)
    x = jax.random.normal(k_x, (B, T, D), jnp.float32)
    params = init_params(k_p, D, H, O)

    out = sentiment_rnn_forward(x, params)
    out = jax.block_until_ready(out)

    ref = jax.block_until_ready(reference_forward(x, params))
    # Tolerance loosened because the recurrent h @ whh matmul uses bf16 operands
    # (f32 accumulation); the reference stays full f32.
    np.testing.assert_allclose(np.asarray(out), np.asarray(ref), rtol=2e-2, atol=2e-2)

    print("KERNEL_OK")
</pallas_src>

<mosaic_0001>
module attributes {stable_mosaic.version = 11 : i64} {
  func.func @lstm_fc_kernel(%arg0: memref<8x8x32xf32, #tpu.memory_space<vmem>>, %arg1: memref<32x128xf32, #tpu.memory_space<vmem>>, %arg2: memref<32x128xf32, #tpu.memory_space<vmem>>, %arg3: memref<1x128xf32, #tpu.memory_space<vmem>>, %arg4: memref<32x2xf32, #tpu.memory_space<vmem>>, %arg5: memref<1x2xf32, #tpu.memory_space<vmem>>, %arg6: memref<8x2xf32, #tpu.memory_space<vmem>>) attributes {dimension_semantics = [], scalar_prefetch = 0 : i64, scratch_operands = 0 : i64, tpu.core_type = #tpu.core_type<tc>} {
    %c0 = arith.constant 0 : index
    %c0_0 = arith.constant 0 : index
    %c0_1 = arith.constant 0 : index
    %0 = vector.load %arg0[%c0, %c0_0, %c0_1] : memref<8x8x32xf32, #tpu.memory_space<vmem>>, vector<8x8x32xf32>
    %1 = vector.shape_cast %0 : vector<8x8x32xf32> to vector<64x32xf32>
    %c0_2 = arith.constant 0 : index
    %c0_3 = arith.constant 0 : index
    %2 = vector.load %arg1[%c0_2, %c0_3] : memref<32x128xf32, #tpu.memory_space<vmem>>, vector<32x128xf32>
    %cst = arith.constant dense<0.000000e+00> : vector<64x128xf32>
    %3 = tpu.matmul %1, %2, %cst {dimension_numbers = #tpu.dot_dimension_numbers<[1], [0], [0], [1], [0, 0, 1, 1], [], []>} : vector<64x32xf32>, vector<32x128xf32>, vector<64x128xf32> -> vector<64x128xf32>
    %c0_4 = arith.constant 0 : index
    %c0_5 = arith.constant 0 : index
    %4 = vector.load %arg3[%c0_4, %c0_5] : memref<1x128xf32, #tpu.memory_space<vmem>>, vector<1x128xf32>
    %5 = vector.broadcast %4 : vector<1x128xf32> to vector<64x128xf32>
    %6 = arith.addf %3, %5 : vector<64x128xf32>
    %c0_6 = arith.constant 0 : index
    %c0_7 = arith.constant 0 : index
    %7 = vector.load %arg2[%c0_6, %c0_7] : memref<32x128xf32, #tpu.memory_space<vmem>>, vector<32x128xf32>
    %8 = arith.truncf %7 : vector<32x128xf32> to vector<32x128xbf16>
    %cst_8 = arith.constant 0.000000e+00 : f32
    %9 = vector.broadcast %cst_8 : f32 to vector<8x32xf32>
    %cst_9 = arith.constant 0.000000e+00 : f32
    %10 = vector.broadcast %cst_9 : f32 to vector<8x32xf32>
    %11 = vector.extract_strided_slice %6 {offsets = [0, 0], sizes = [8, 128], strides = [1, 1]} : vector<64x128xf32> to vector<8x128xf32>
    %12 = arith.truncf %9 : vector<8x32xf32> to vector<8x32xbf16>
    %cst_10 = arith.constant dense<0.000000e+00> : vector<8x128xf32>
    %13 = tpu.matmul %12, %8, %cst_10 {dimension_numbers = #tpu.dot_dimension_numbers<[1], [0], [0], [1], [0, 0, 1, 1], [], []>} : vector<8x32xbf16>, vector<32x128xbf16>, vector<8x128xf32> -> vector<8x128xf32>
    %14 = arith.addf %11, %13 : vector<8x128xf32>
    %15 = arith.negf %14 : vector<8x128xf32>
    %16 = math.exp %15 : vector<8x128xf32>
    %cst_11 = arith.constant 1.000000e+00 : f32
    %17 = vector.broadcast %cst_11 : f32 to vector<8x128xf32>
    %18 = arith.addf %17, %16 : vector<8x128xf32>
    %19 = arith.divf %17, %18 : vector<8x128xf32>
    %20 = math.tanh %14 : vector<8x128xf32>
    %21 = vector.extract_strided_slice %19 {offsets = [0, 0], sizes = [8, 32], strides = [1, 1]} : vector<8x128xf32> to vector<8x32xf32>
    %22 = vector.extract_strided_slice %19 {offsets = [0, 32], sizes = [8, 32], strides = [1, 1]} : vector<8x128xf32> to vector<8x32xf32>
    %23 = vector.extract_strided_slice %20 {offsets = [0, 64], sizes = [8, 32], strides = [1, 1]} : vector<8x128xf32> to vector<8x32xf32>
    %24 = vector.extract_strided_slice %19 {offsets = [0, 96], sizes = [8, 32], strides = [1, 1]} : vector<8x128xf32> to vector<8x32xf32>
    %25 = arith.mulf %22, %10 : vector<8x32xf32>
    %26 = arith.mulf %21, %23 : vector<8x32xf32>
    %27 = arith.addf %25, %26 : vector<8x32xf32>
    %28 = math.tanh %27 : vector<8x32xf32>
    %29 = arith.mulf %24, %28 : vector<8x32xf32>
    %30 = vector.extract_strided_slice %6 {offsets = [8, 0], sizes = [8, 128], strides = [1, 1]} : vector<64x128xf32> to vector<8x128xf32>
    %31 = arith.truncf %29 : vector<8x32xf32> to vector<8x32xbf16>
    %cst_12 = arith.constant dense<0.000000e+00> : vector<8x128xf32>
    %32 = tpu.matmul %31, %8, %cst_12 {dimension_numbers = #tpu.dot_dimension_numbers<[1], [0], [0], [1], [0, 0, 1, 1], [], []>} : vector<8x32xbf16>, vector<32x128xbf16>, vector<8x128xf32> -> vector<8x128xf32>
    %33 = arith.addf %30, %32 : vector<8x128xf32>
    %34 = arith.negf %33 : vector<8x128xf32>
    %35 = math.exp %34 : vector<8x128xf32>
    %cst_13 = arith.constant 1.000000e+00 : f32
    %36 = vector.broadcast %cst_13 : f32 to vector<8x128xf32>
    %37 = arith.addf %36, %35 : vector<8x128xf32>
    %38 = arith.divf %36, %37 : vector<8x128xf32>
    %39 = math.tanh %33 : vector<8x128xf32>
    %40 = vector.extract_strided_slice %38 {offsets = [0, 0], sizes = [8, 32], strides = [1, 1]} : vector<8x128xf32> to vector<8x32xf32>
    %41 = vector.extract_strided_slice %38 {offsets = [0, 32], sizes = [8, 32], strides = [1, 1]} : vector<8x128xf32> to vector<8x32xf32>
    %42 = vector.extract_strided_slice %39 {offsets = [0, 64], sizes = [8, 32], strides = [1, 1]} : vector<8x128xf32> to vector<8x32xf32>
    %43 = vector.extract_strided_slice %38 {offsets = [0, 96], sizes = [8, 32], strides = [1, 1]} : vector<8x128xf32> to vector<8x32xf32>
    %44 = arith.mulf %41, %27 : vector<8x32xf32>
    %45 = arith.mulf %40, %42 : vector<8x32xf32>
    %46 = arith.addf %44, %45 : vector<8x32xf32>
    %47 = math.tanh %46 : vector<8x32xf32>
    %48 = arith.mulf %43, %47 : vector<8x32xf32>
    %49 = vector.extract_strided_slice %6 {offsets = [16, 0], sizes = [8, 128], strides = [1, 1]} : vector<64x128xf32> to vector<8x128xf32>
    %50 = arith.truncf %48 : vector<8x32xf32> to vector<8x32xbf16>
    %cst_14 = arith.constant dense<0.000000e+00> : vector<8x128xf32>
    %51 = tpu.matmul %50, %8, %cst_14 {dimension_numbers = #tpu.dot_dimension_numbers<[1], [0], [0], [1], [0, 0, 1, 1], [], []>} : vector<8x32xbf16>, vector<32x128xbf16>, vector<8x128xf32> -> vector<8x128xf32>
    %52 = arith.addf %49, %51 : vector<8x128xf32>
    %53 = arith.negf %52 : vector<8x128xf32>
    %54 = math.exp %53 : vector<8x128xf32>
    %cst_15 = arith.constant 1.000000e+00 : f32
    %55 = vector.broadcast %cst_15 : f32 to vector<8x128xf32>
    %56 = arith.addf %55, %54 : vector<8x128xf32>
    %57 = arith.divf %55, %56 : vector<8x128xf32>
    %58 = math.tanh %52 : vector<8x128xf32>
    %59 = vector.extract_strided_slice %57 {offsets = [0, 0], sizes = [8, 32], strides = [1, 1]} : vector<8x128xf32> to vector<8x32xf32>
    %60 = vector.extract_strided_slice %57 {offsets = [0, 32], sizes = [8, 32], strides = [1, 1]} : vector<8x128xf32> to vector<8x32xf32>
    %61 = vector.extract_strided_slice %58 {offsets = [0, 64], sizes = [8, 32], strides = [1, 1]} : vector<8x128xf32> to vector<8x32xf32>
    %62 = vector.extract_strided_slice %57 {offsets = [0, 96], sizes = [8, 32], strides = [1, 1]} : vector<8x128xf32> to vector<8x32xf32>
    %63 = arith.mulf %60, %46 : vector<8x32xf32>
    %64 = arith.mulf %59, %61 : vector<8x32xf32>
    %65 = arith.addf %63, %64 : vector<8x32xf32>
    %66 = math.tanh %65 : vector<8x32xf32>
    %67 = arith.mulf %62, %66 : vector<8x32xf32>
    %68 = vector.extract_strided_slice %6 {offsets = [24, 0], sizes = [8, 128], strides = [1, 1]} : vector<64x128xf32> to vector<8x128xf32>
    %69 = arith.truncf %67 : vector<8x32xf32> to vector<8x32xbf16>
    %cst_16 = arith.constant dense<0.000000e+00> : vector<8x128xf32>
    %70 = tpu.matmul %69, %8, %cst_16 {dimension_numbers = #tpu.dot_dimension_numbers<[1], [0], [0], [1], [0, 0, 1, 1], [], []>} : vector<8x32xbf16>, vector<32x128xbf16>, vector<8x128xf32> -> vector<8x128xf32>
    %71 = arith.addf %68, %70 : vector<8x128xf32>
    %72 = arith.negf %71 : vector<8x128xf32>
    %73 = math.exp %72 : vector<8x128xf32>
    %cst_17 = arith.constant 1.000000e+00 : f32
    %74 = vector.broadcast %cst_17 : f32 to vector<8x128xf32>
    %75 = arith.addf %74, %73 : vector<8x128xf32>
    %76 = arith.divf %74, %75 : vector<8x128xf32>
    %77 = math.tanh %71 : vector<8x128xf32>
    %78 = vector.extract_strided_slice %76 {offsets = [0, 0], sizes = [8, 32], strides = [1, 1]} : vector<8x128xf32> to vector<8x32xf32>
    %79 = vector.extract_strided_slice %76 {offsets = [0, 32], sizes = [8, 32], strides = [1, 1]} : vector<8x128xf32> to vector<8x32xf32>
    %80 = vector.extract_strided_slice %77 {offsets = [0, 64], sizes = [8, 32], strides = [1, 1]} : vector<8x128xf32> to vector<8x32xf32>
    %81 = vector.extract_strided_slice %76 {offsets = [0, 96], sizes = [8, 32], strides = [1, 1]} : vector<8x128xf32> to vector<8x32xf32>
    %82 = arith.mulf %79, %65 : vector<8x32xf32>
    %83 = arith.mulf %78, %80 : vector<8x32xf32>
    %84 = arith.addf %82, %83 : vector<8x32xf32>
    %85 = math.tanh %84 : vector<8x32xf32>
    %86 = arith.mulf %81, %85 : vector<8x32xf32>
    %87 = vector.extract_strided_slice %6 {offsets = [32, 0], sizes = [8, 128], strides = [1, 1]} : vector<64x128xf32> to vector<8x128xf32>
    %88 = arith.truncf %86 : vector<8x32xf32> to vector<8x32xbf16>
    %cst_18 = arith.constant dense<0.000000e+00> : vector<8x128xf32>
    %89 = tpu.matmul %88, %8, %cst_18 {dimension_numbers = #tpu.dot_dimension_numbers<[1], [0], [0], [1], [0, 0, 1, 1], [], []>} : vector<8x32xbf16>, vector<32x128xbf16>, vector<8x128xf32> -> vector<8x128xf32>
    %90 = arith.addf %87, %89 : vector<8x128xf32>
    %91 = arith.negf %90 : vector<8x128xf32>
    %92 = math.exp %91 : vector<8x128xf32>
    %cst_19 = arith.constant 1.000000e+00 : f32
    %93 = vector.broadcast %cst_19 : f32 to vector<8x128xf32>
    %94 = arith.addf %93, %92 : vector<8x128xf32>
    %95 = arith.divf %93, %94 : vector<8x128xf32>
    %96 = math.tanh %90 : vector<8x128xf32>
    %97 = vector.extract_strided_slice %95 {offsets = [0, 0], sizes = [8, 32], strides = [1, 1]} : vector<8x128xf32> to vector<8x32xf32>
    %98 = vector.extract_strided_slice %95 {offsets = [0, 32], sizes = [8, 32], strides = [1, 1]} : vector<8x128xf32> to vector<8x32xf32>
    %99 = vector.extract_strided_slice %96 {offsets = [0, 64], sizes = [8, 32], strides = [1, 1]} : vector<8x128xf32> to vector<8x32xf32>
    %100 = vector.extract_strided_slice %95 {offsets = [0, 96], sizes = [8, 32], strides = [1, 1]} : vector<8x128xf32> to vector<8x32xf32>
    %101 = arith.mulf %98, %84 : vector<8x32xf32>
    %102 = arith.mulf %97, %99 : vector<8x32xf32>
    %103 = arith.addf %101, %102 : vector<8x32xf32>
    %104 = math.tanh %103 : vector<8x32xf32>
    %105 = arith.mulf %100, %104 : vector<8x32xf32>
    %106 = vector.extract_strided_slice %6 {offsets = [40, 0], sizes = [8, 128], strides = [1, 1]} : vector<64x128xf32> to vector<8x128xf32>
    %107 = arith.truncf %105 : vector<8x32xf32> to vector<8x32xbf16>
    %cst_20 = arith.constant dense<0.000000e+00> : vector<8x128xf32>
    %108 = tpu.matmul %107, %8, %cst_20 {dimension_numbers = #tpu.dot_dimension_numbers<[1], [0], [0], [1], [0, 0, 1, 1], [], []>} : vector<8x32xbf16>, vector<32x128xbf16>, vector<8x128xf32> -> vector<8x128xf32>
    %109 = arith.addf %106, %108 : vector<8x128xf32>
    %110 = arith.negf %109 : vector<8x128xf32>
    %111 = math.exp %110 : vector<8x128xf32>
    %cst_21 = arith.constant 1.000000e+00 : f32
    %112 = vector.broadcast %cst_21 : f32 to vector<8x128xf32>
    %113 = arith.addf %112, %111 : vector<8x128xf32>
    %114 = arith.divf %112, %113 : vector<8x128xf32>
    %115 = math.tanh %109 : vector<8x128xf32>
    %116 = vector.extract_strided_slice %114 {offsets = [0, 0], sizes = [8, 32], strides = [1, 1]} : vector<8x128xf32> to vector<8x32xf32>
    %117 = vector.extract_strided_slice %114 {offsets = [0, 32], sizes = [8, 32], strides = [1, 1]} : vector<8x128xf32> to vector<8x32xf32>
    %118 = vector.extract_strided_slice %115 {offsets = [0, 64], sizes = [8, 32], strides = [1, 1]} : vector<8x128xf32> to vector<8x32xf32>
    %119 = vector.extract_strided_slice %114 {offsets = [0, 96], sizes = [8, 32], strides = [1, 1]} : vector<8x128xf32> to vector<8x32xf32>
    %120 = arith.mulf %117, %103 : vector<8x32xf32>
    %121 = arith.mulf %116, %118 : vector<8x32xf32>
    %122 = arith.addf %120, %121 : vector<8x32xf32>
    %123 = math.tanh %122 : vector<8x32xf32>
    %124 = arith.mulf %119, %123 : vector<8x32xf32>
    %125 = vector.extract_strided_slice %6 {offsets = [48, 0], sizes = [8, 128], strides = [1, 1]} : vector<64x128xf32> to vector<8x128xf32>
    %126 = arith.truncf %124 : vector<8x32xf32> to vector<8x32xbf16>
    %cst_22 = arith.constant dense<0.000000e+00> : vector<8x128xf32>
    %127 = tpu.matmul %126, %8, %cst_22 {dimension_numbers = #tpu.dot_dimension_numbers<[1], [0], [0], [1], [0, 0, 1, 1], [], []>} : vector<8x32xbf16>, vector<32x128xbf16>, vector<8x128xf32> -> vector<8x128xf32>
    %128 = arith.addf %125, %127 : vector<8x128xf32>
    %129 = arith.negf %128 : vector<8x128xf32>
    %130 = math.exp %129 : vector<8x128xf32>
    %cst_23 = arith.constant 1.000000e+00 : f32
    %131 = vector.broadcast %cst_23 : f32 to vector<8x128xf32>
    %132 = arith.addf %131, %130 : vector<8x128xf32>
    %133 = arith.divf %131, %132 : vector<8x128xf32>
    %134 = math.tanh %128 : vector<8x128xf32>
    %135 = vector.extract_strided_slice %133 {offsets = [0, 0], sizes = [8, 32], strides = [1, 1]} : vector<8x128xf32> to vector<8x32xf32>
    %136 = vector.extract_strided_slice %133 {offsets = [0, 32], sizes = [8, 32], strides = [1, 1]} : vector<8x128xf32> to vector<8x32xf32>
    %137 = vector.extract_strided_slice %134 {offsets = [0, 64], sizes = [8, 32], strides = [1, 1]} : vector<8x128xf32> to vector<8x32xf32>
    %138 = vector.extract_strided_slice %133 {offsets = [0, 96], sizes = [8, 32], strides = [1, 1]} : vector<8x128xf32> to vector<8x32xf32>
    %139 = arith.mulf %136, %122 : vector<8x32xf32>
    %140 = arith.mulf %135, %137 : vector<8x32xf32>
    %141 = arith.addf %139, %140 : vector<8x32xf32>
    %142 = math.tanh %141 : vector<8x32xf32>
    %143 = arith.mulf %138, %142 : vector<8x32xf32>
    %144 = vector.extract_strided_slice %6 {offsets = [56, 0], sizes = [8, 128], strides = [1, 1]} : vector<64x128xf32> to vector<8x128xf32>
    %145 = arith.truncf %143 : vector<8x32xf32> to vector<8x32xbf16>
    %cst_24 = arith.constant dense<0.000000e+00> : vector<8x128xf32>
    %146 = tpu.matmul %145, %8, %cst_24 {dimension_numbers = #tpu.dot_dimension_numbers<[1], [0], [0], [1], [0, 0, 1, 1], [], []>} : vector<8x32xbf16>, vector<32x128xbf16>, vector<8x128xf32> -> vector<8x128xf32>
    %147 = arith.addf %144, %146 : vector<8x128xf32>
    %148 = arith.negf %147 : vector<8x128xf32>
    %149 = math.exp %148 : vector<8x128xf32>
    %cst_25 = arith.constant 1.000000e+00 : f32
    %150 = vector.broadcast %cst_25 : f32 to vector<8x128xf32>
    %151 = arith.addf %150, %149 : vector<8x128xf32>
    %152 = arith.divf %150, %151 : vector<8x128xf32>
    %153 = math.tanh %147 : vector<8x128xf32>
    %154 = vector.extract_strided_slice %152 {offsets = [0, 0], sizes = [8, 32], strides = [1, 1]} : vector<8x128xf32> to vector<8x32xf32>
    %155 = vector.extract_strided_slice %152 {offsets = [0, 32], sizes = [8, 32], strides = [1, 1]} : vector<8x128xf32> to vector<8x32xf32>
    %156 = vector.extract_strided_slice %153 {offsets = [0, 64], sizes = [8, 32], strides = [1, 1]} : vector<8x128xf32> to vector<8x32xf32>
    %157 = vector.extract_strided_slice %152 {offsets = [0, 96], sizes = [8, 32], strides = [1, 1]} : vector<8x128xf32> to vector<8x32xf32>
    %158 = arith.mulf %155, %141 : vector<8x32xf32>
    %159 = arith.mulf %154, %156 : vector<8x32xf32>
    %160 = arith.addf %158, %159 : vector<8x32xf32>
    %161 = math.tanh %160 : vector<8x32xf32>
    %162 = arith.mulf %157, %161 : vector<8x32xf32>
    %c0_26 = arith.constant 0 : index
    %c0_27 = arith.constant 0 : index
    %163 = vector.load %arg4[%c0_26, %c0_27] : memref<32x2xf32, #tpu.memory_space<vmem>>, vector<32x2xf32>
    %cst_28 = arith.constant dense<0.000000e+00> : vector<8x2xf32>
    %164 = tpu.matmul %162, %163, %cst_28 {dimension_numbers = #tpu.dot_dimension_numbers<[1], [0], [0], [1], [0, 0, 1, 1], [], []>} : vector<8x32xf32>, vector<32x2xf32>, vector<8x2xf32> -> vector<8x2xf32>
    %c0_29 = arith.constant 0 : index
    %c0_30 = arith.constant 0 : index
    %165 = vector.load %arg5[%c0_29, %c0_30] : memref<1x2xf32, #tpu.memory_space<vmem>>, vector<1x2xf32>
    %166 = vector.broadcast %165 : vector<1x2xf32> to vector<8x2xf32>
    %167 = arith.addf %164, %166 : vector<8x2xf32>
    %c0_31 = arith.constant 0 : index
    %c0_32 = arith.constant 0 : index
    %168 = vector.load %arg6[%c0_31, %c0_32] : memref<8x2xf32, #tpu.memory_space<vmem>>, vector<8x2xf32>
    tpu.vector_store %arg6[%c0_31, %c0_32], %167 {strides = array<i32>} : memref<8x2xf32, #tpu.memory_space<vmem>>, vector<8x2xf32>,
    return
  }
}

</mosaic_0001>

<bundles_post_ra>
// kernel: tpu_custom_call.1
= control target key start
LH: loop header
LB: loop body
LE: loop exit
PB: predicated region body
PF: predicated region fallthrough
CT: control target
= control target key end

     0   :  { %11 = vsyncpa [#allocation3], 0  ;;  %s1397_s0 = inlined_call_operand.hbm [shape: f32[8,8,32], index: 0, kind: input, shape index: {}]   ;;  %s1398_s1 = inlined_call_operand.vmem [shape: f32[32,128], index: 1, kind: input, shape index: {}]   ;;  %s1399_s2 = inlined_call_operand.hbm [shape: f32[32,128], index: 2, kind: input, shape index: {}]   ;;  %s1400_s3 = inlined_call_operand.vmem [shape: f32[1,128], index: 3, kind: input, shape index: {}]   ;;  %s1401_s4 = inlined_call_operand.vmem [shape: f32[32,2], index: 4, kind: input, shape index: {}]   ;;  %s1402_s5 = inlined_call_operand.vmem [shape: f32[1,2], index: 5, kind: input, shape index: {}]   ;;  %s1403_s6 = inlined_call_operand.vmem [shape: f32[8,2], index: 6, kind: output, shape index: {}]  }
   0x1   :  { %12 = vsyncpa [#allocation5], 0  ;;  %s1171_s21 = smov [#allocation2]   ;;  %s1123_s25 = scalar_lea.hbm %s1397_s0, 1024 }
   0x2   :  { %s18_s22 = sshll.u32 %s1171_s21, 4  ;;  %p1124_p0 = scmp.ne.s32.totalorder %s1397_s0, %s1123_s25  ;;  %s19_s22 = int_to_ptr.vmem [resolvable:$true] %s18_s22 }
   0x3   :  { %p1127_p1 = scmp.lt.u32.totalorder %s1123_s25, %s1397_s0 }
   0x5   :  { %p1129_p2 = pnand %p1127_p1, %p1124_p0 }
   0x7   :  { %1132 = shalt.err (!%p1129_p2)
}
   0x8   :  { %s1133_s30 = scalar_lea.vmem %s19_s22, 1024  ;;  %p1138_p4 = scmp.lt.s32.totalorder %s19_s22, %s19_s22 }
   0x9   :  { %p1134_p3 = scmp.ne.s32.totalorder %s19_s22, %s1133_s30  ;;  %p1139_p5 = scmp.lt.s32.totalorder %s1133_s30, %s1133_s30 }
   0xb   :  { %p1140_p6 = por %p1139_p5, %p1138_p4 }
   0xd   :  { %p1141_p7 = pnand %p1140_p6, %p1134_p3 }
   0xf   :  { %1144 = shalt.err (!%p1141_p7)
}
  0x10   :  { %s1172_s7 = smov 128   ;;  %s1173_s8 = smov 8  }
  0x11   :  { %24 = dma.hbm_to_vmem [thread:$0]  %s1397_s0, 1024, %s19_s22, [#allocation3], %s1172_s7, %s1172_s7, %s1173_s8  }
  0x12   :  { %s1174_s11 = smov [#allocation4]   ;;  %s1145_s15 = scalar_lea.hbm %s1399_s2, 512 }
  0x13   :  { %s32_s12 = sshll.u32 %s1174_s11, 4  ;;  %p1146_p8 = scmp.ne.s32.totalorder %s1399_s2, %s1145_s15  ;;  %s33_s12 = int_to_ptr.vmem [resolvable:$true] %s32_s12 }
  0x14   :  { %p1149_p9 = scmp.lt.u32.totalorder %s1145_s15, %s1399_s2 }
  0x16   :  { %p1151_p10 = pnand %p1149_p9, %p1146_p8 }
  0x18   :  { %1154 = shalt.err (!%p1151_p10)
}
  0x19   :  { %s1155_s20 = scalar_lea.vmem %s33_s12, 512  ;;  %p1160_p12 = scmp.lt.s32.totalorder %s33_s12, %s33_s12 }
  0x1a   :  { %p1156_p11 = scmp.ne.s32.totalorder %s33_s12, %s1155_s20  ;;  %p1161_p13 = scmp.lt.s32.totalorder %s1155_s20, %s1155_s20 }
  0x1c   :  { %p1162_p0 = por %p1161_p13, %p1160_p12 }
  0x1e   :  { %p1163_p1 = pnand %p1162_p0, %p1156_p11 }
  0x20   :  { %1166 = shalt.err (!%p1163_p1)
}
  0x21   :  { %38 = dma.hbm_to_vmem [thread:$0]  %s1399_s2, 512, %s33_s12, [#allocation5], %s1172_s7, %s1172_s7, %s1173_s8  }
  0x22   :  { %1167 = dma.done.wait [#allocation3], 1024  }
  0x23   :  { %1168 = vsyncadd [#allocation3], 4294966272 }
  0x24   :  { %1169 = dma.done.wait [#allocation5], 512  }
  0x25   :  { %1170 = vsyncadd [#allocation5], 4294966784  ;;  %v1175_v0 = vmov 0.0   ;;  %vm1176_vm0 = vmmov 0   ;;  %v60_v1 = vld [vmem:[%s1398_s1] sm:$0xff]  ;;  %v61_v2 = vld [vmem:[%s1398_s1 + $0x8] sm:$0xff] }
  0x26   :  { %960 = vmatprep.subr.bf16.mxu1 %v1175_v0  ;;  %964 = vmatprep.mubr.msk.bf16.mxu1 %vm1176_vm0, %v1175_v0  ;;  %v201_v3 = vld [vmem:[#allocation4] sm:$0xff]  ;;  %vm71_vm1 = vcmask 261120   ;;  %v1035_v4 = vpack.c.bf16 %v61_v2, %v60_v1  ;;  %v202_v5 = vld [vmem:[#allocation4 + $0x8] sm:$0xff]  ;;  %v62_v6 = vld [vmem:[%s1398_s1 + $0x10] sm:$0xff]  ;;  %v1177_v15 = vmov 0   ;;  %s1178_s30 = smov 64  }
  0x27   :  { %v63_v7 = vld [vmem:[%s1398_s1 + $0x18] sm:$0xff]  ;;  %v1255_v8 = vpack.c.bf16 %v202_v5, %v201_v3  ;;  %v203_v10 = vld [vmem:[#allocation4 + $0x10] sm:$0xff]  ;;  %v52_v12 = vld [vmem:[#allocation2] sm:$0xff]  ;;  %vm865_vm2 = vcmask 15360  }
  0x28   :  { %v1039_v9 = vpack.c.bf16 %v63_v7, %v62_v6  ;;  %v204_v11 = vld [vmem:[#allocation4 + $0x18] sm:$0xff]  ;;  %1036 = vmatprep.subr.bf16.mxu0 %v1035_v4  ;;  %948 = vmatprep.mubr.msk.f32.mxu0 %vm71_vm1, %v52_v12  ;;  %v53_v14 = vld [vmem:[#allocation2 + $0x8] sm:$0xff]  ;;  %v1279_v16 = vld [vmem:[%s1400_s3] ss:$0 sm:$0xff]  ;;  %s1179_s3 = smov 32  }
  0x29   :  { %1038 = vmatpush3.bf16.msra.mxu0 %v1035_v4  ;;  %961 = vmatpush3.bf16.msra.mxu1 %v1255_v8  ;;  %v1259_v13 = vpack.c.bf16 %v204_v11, %v203_v10  ;;  %v54_v56 = vld [vmem:[#allocation2 + $0x10] sm:$0xff]  ;;  %v55_v57 = vld [vmem:[#allocation2 + $0x18] sm:$0xff]  ;;  %v56_v58 = vld [vmem:[#allocation2 + $0x20] sm:$0xff] }
  0x2a   :  { %1040 = vmatprep.subr.bf16.mxu0 %v1039_v9  ;;  %962 = vmatprep.subr.bf16.mxu1 %v1175_v0  ;;  %v57_v59 = vld [vmem:[#allocation2 + $0x28] sm:$0xff]  ;;  %v58_v60 = vld [vmem:[#allocation2 + $0x30] sm:$0xff]  ;;  %v59_v61 = vld [vmem:[#allocation2 + $0x38] sm:$0xff] }
  0x2d   :  { %1042 = vmatpush3.bf16.msra.mxu0 %v1039_v9  ;;  %963 = vmatpush3.bf16.msra.mxu1 %v1259_v13 }
  0x2e   :  { %968 = vmatprep.subr.bf16.mxu1 %v1175_v0  ;;  %976 = vmatprep.subr.bf16.mxu0 %v1175_v0 }
  0x30   :  { %949 = vmatmul.mubr.msk.f32.vlgmr.msra.gmra.mrb[0].mxu0 %vm71_vm1, %v53_v14  ;;  %965 = vmatmul.mubr.bf16.vlgmr.msra.gmra.mrb[0].mxu1 %v1177_v15 }
  0x31   :  { %969 = vmatpush3.bf16.msra.mxu1 %v1255_v8  ;;  %972 = vmatprep.mubr.msk.bf16.mxu1 %vm1176_vm0, %v1175_v0 }
  0x32   :  { %970 = vmatprep.subr.bf16.mxu1 %v1175_v0  ;;  %977 = vmatpush3.bf16.msra.mxu0 %v1255_v8 }
  0x33   :  { %978 = vmatprep.subr.bf16.mxu0 %v1175_v0  ;;  %951 = vmatprep.mubr.msk.f32.mxu0 %vm71_vm1, %v54_v56 }
  0x34   :  { %952 = vmatmul.mubr.msk.f32.gmra.mrb[2].mxu0 %vm71_vm1, %v55_v57 }
  0x35   :  { %971 = vmatpush3.bf16.msra.mxu1 %v1259_v13  ;;  %954 = vmatprep.mubr.msk.f32.mxu0 %vm71_vm1, %v56_v58 }
  0x36   :  { %979 = vmatpush3.bf16.msra.mxu0 %v1259_v13  ;;  %984 = vmatprep.subr.bf16.mxu1 %v1175_v0 }
  0x37   :  { %992 = vmatprep.subr.bf16.mxu0 %v1175_v0 }
  0x38   :  { %955 = vmatmul.mubr.msk.f32.gmra.mrb[4].mxu0 %vm71_vm1, %v57_v59 }
  0x39   :  { %957 = vmatprep.mubr.msk.f32.mxu0 %vm71_vm1, %v58_v60 }
  0x3c   :  { %958 = vmatmul.mubr.msk.f32.gmra.mrb[6].mxu0 %vm71_vm1, %v59_v61 }
  0x3d   :  { %980 = vmatprep.mubr.msk.bf16.mxu0 %vm1176_vm0, %v1175_v0 }
 0x103   :  { %v950_v17 = vpop.f32.mrb[0].mxu0  ;;  %v244_v18 = vpop.f32.mrb[0].mxu1 }
 0x104   :  { %v162_v19 = vpop.f32.mrb[1].mxu0  ;;  %v966_v20 = vpop.f32.mrb[1].mxu1  ;;  %v168_v40 = vadd.f32 %v950_v17, %v1279_v16 }
 0x105   :  { %v163_v21 = vadd.f32 %v1279_v16, %v162_v19  ;;  %v247_v22 = vpop.f32.mrb[2].mxu1 }
 0x106   :  { %v967_v23 = vpop.f32.mrb[3].mxu1 }
 0x107   :  { %v250_v24 = vadd.f32 %v244_v18, %v163_v21  ;;  %v953_v3 = vpop.f32.mrb[2].mxu0 }
 0x108   :  { %v172_v4 = vpop.f32.mrb[3].mxu0 }
 0x109   :  { %1059 = vtanh.f32 %v250_v24  ;;  %v882_v26 = vmul.f32 -1.442695, %v250_v24  ;;  %v173_v11 = vadd.f32 %v1279_v16, %v172_v4 }
 0x10b   :  { %1061 = vpow2.f32 %v882_v26  ;;  %v1306_v5 = vpop.f32.mrb[4].mxu0 }
 0x10c   :  { %v1308_v6 = vpop.f32.mrb[5].mxu0 }
 0x10f   :  { %v1310_v7 = vpop.f32.mrb[6].mxu0 }
 0x110   :  { %v1312_v9 = vpop.f32.mrb[7].mxu0 }
 0x113   :  { %v1060_v25 = vpop.eup %1059 }
 0x114   :  { %260 = vrot.lane.b32.xlu0 %v1060_v25, %s1178_s30 }
 0x115   :  { %v1062_v27 = vpop.eup %1061 }
 0x116   :  { %v254_v28 = vadd.f32 1.0, %v1062_v27 }
 0x118   :  { %1063 = vrcp.f32 %v254_v28 }
 0x122   :  { %v1064_v29 = vpop.eup %1063 }
 0x123   :  { %v258_v32 = vmul.f32 0.0, %v1064_v29 }
 0x186   :  { %v261_v30 = vpop.permute.xlu0 %260 }
 0x187   :  { %v263_v31 = vmul.f32 %v1064_v29, %v261_v30 }
 0x189   :  { %265 = vrot.lane.b32.xlu0 %v263_v31, %s1179_s3 }
 0x1fb   :  { %v266_v33 = vpop.permute.xlu0 %265 }
 0x1fc   :  { %v268_v34 = vadd.f32 %v266_v33, %v258_v32 }
 0x1fe   :  { %1065 = vtanh.f32 %v268_v34 }
 0x208   :  { %v1066_v35 = vpop.eup %1065 }
 0x209   :  { %271 = vrot.lane.b32.xlu1 %v1066_v35, %s1178_s30 }
 0x27b   :  { %v272_v36 = vpop.permute.xlu1 %271 }
 0x27c   :  { %v274_v37 = vmul.f32 %v1064_v29, %v272_v36 }
 0x27e   :  { %v275_v38 = vpack.c.bf16 %v274_v37, %v274_v37 }
 0x280   :  { %277 = vrot.lane.b32.xlu1 %v275_v38, %s1179_s3 }
 0x2f2   :  { %v278_v39 = vpop.permute.xlu1 %277 }
 0x2f3   :  { %973 = vmatmul.mubr.msk.bf16.vlgmr.msra.gmra.mrb[4].mxu1 %vm71_vm1, %v278_v39 }
 0x2f4   :  { %985 = vmatpush3.bf16.msra.mxu1 %v1255_v8  ;;  %988 = vmatprep.mubr.msk.bf16.mxu1 %vm1176_vm0, %v1175_v0 }
 0x2f5   :  { %986 = vmatprep.subr.bf16.mxu1 %v1175_v0 }
 0x2f8   :  { %987 = vmatpush3.bf16.msra.mxu1 %v1259_v13 }
 0x2f9   :  { %1000 = vmatprep.subr.bf16.mxu1 %v1175_v0 }
 0x3c6   :  { %v316_v41 = vpop.f32.mrb[4].mxu1 }
 0x3c7   :  { %v322_v42 = vadd.f32 %v316_v41, %v168_v40  ;;  %v974_v43 = vpop.f32.mrb[5].mxu1 }
 0x3c8   :  { %v319_v44 = vpop.f32.mrb[6].mxu1 }
 0x3c9   :  { %1067 = vtanh.f32 %v322_v42  ;;  %v975_v45 = vpop.f32.mrb[7].mxu1  ;;  %v884_v47 = vmul.f32 -1.442695, %v322_v42 }
 0x3cb   :  { %1069 = vpow2.f32 %v884_v47 }
 0x3d3   :  { %v1068_v46 = vpop.eup %1067 }
 0x3d4   :  { %332 = vrot.lane.b32.xlu0 %v1068_v46, %s1178_s30 }
 0x3d5   :  { %v1070_v48 = vpop.eup %1069 }
 0x3d6   :  { %v326_v49 = vadd.f32 1.0, %v1070_v48 }
 0x3d8   :  { %1071 = vrcp.f32 %v326_v49 }
 0x3e2   :  { %v1072_v50 = vpop.eup %1071 }
 0x3e3   :  { %v330_v53 = vmul.f32 %v1072_v50, %v268_v34  ;;  %v178_v34 = vadd.f32 %v953_v3, %v1279_v16 }
 0x446   :  { %v333_v51 = vpop.permute.xlu0 %332 }
 0x447   :  { %v335_v52 = vmul.f32 %v1072_v50, %v333_v51 }
 0x449   :  { %337 = vrot.lane.b32.xlu1 %v335_v52, %s1179_s3 }
 0x4bb   :  { %v338_v54 = vpop.permute.xlu1 %337 }
 0x4bc   :  { %v340_v55 = vadd.f32 %v338_v54, %v330_v53 }
 0x4be   :  { %1073 = vtanh.f32 %v340_v55 }
 0x4c8   :  { %v1074_v62 = vpop.eup %1073 }
 0x4c9   :  { %343 = vrot.lane.b32.xlu0 %v1074_v62, %s1178_s30 }
 0x53b   :  { %v344_v63 = vpop.permute.xlu0 %343 }
 0x53c   :  { %v346_v1 = vmul.f32 %v1072_v50, %v344_v63 }
 0x53e   :  { %v347_v2 = vpack.c.bf16 %v346_v1, %v346_v1 }
 0x540   :  { %349 = vrot.lane.b32.xlu1 %v347_v2, %s1179_s3 }
 0x5b2   :  { %v350_v10 = vpop.permute.xlu1 %349 }
 0x5b3   :  { %981 = vmatmul.mubr.msk.bf16.vlgmr.msra.gmra.mrb[8].mxu0 %vm71_vm1, %v350_v10 }
 0x5b4   :  { %993 = vmatpush3.bf16.msra.mxu0 %v1255_v8  ;;  %996 = vmatprep.mubr.msk.bf16.mxu0 %vm1176_vm0, %v1175_v0 }
 0x5b5   :  { %994 = vmatprep.subr.bf16.mxu0 %v1175_v0 }
 0x5b8   :  { %995 = vmatpush3.bf16.msra.mxu0 %v1259_v13 }
 0x5b9   :  { %1008 = vmatprep.subr.bf16.mxu0 %v1175_v0 }
 0x686   :  { %v388_v12 = vpop.f32.mrb[8].mxu0 }
 0x687   :  { %v394_v14 = vadd.f32 %v388_v12, %v173_v11  ;;  %v982_v15 = vpop.f32.mrb[9].mxu0 }
 0x688   :  { %v391_v17 = vpop.f32.mrb[10].mxu0 }
 0x689   :  { %1075 = vtanh.f32 %v394_v14  ;;  %v983_v18 = vpop.f32.mrb[11].mxu0  ;;  %v886_v20 = vmul.f32 -1.442695, %v394_v14 }
 0x68b   :  { %1077 = vpow2.f32 %v886_v20 }
 0x693   :  { %v1076_v19 = vpop.eup %1075 }
 0x694   :  { %404 = vrot.lane.b32.xlu0 %v1076_v19, %s1178_s30  ;;  %v188_v19 = vadd.f32 %v1306_v5, %v1279_v16 }
 0x695   :  { %v1078_v21 = vpop.eup %1077 }
 0x696   :  { %v398_v22 = vadd.f32 1.0, %v1078_v21 }
 0x698   :  { %1079 = vrcp.f32 %v398_v22 }
 0x6a2   :  { %v1080_v23 = vpop.eup %1079 }
 0x6a3   :  { %v402_v26 = vmul.f32 %v1080_v23, %v340_v55  ;;  %v183_v55 = vadd.f32 %v1279_v16, %v1308_v6 }
 0x706   :  { %v405_v24 = vpop.permute.xlu0 %404 }
 0x707   :  { %v407_v25 = vmul.f32 %v1080_v23, %v405_v24 }
 0x709   :  { %409 = vrot.lane.b32.xlu1 %v407_v25, %s1179_s3 }
 0x77b   :  { %v410_v27 = vpop.permute.xlu1 %409 }
 0x77c   :  { %v412_v28 = vadd.f32 %v410_v27, %v402_v26 }
 0x77e   :  { %1081 = vtanh.f32 %v412_v28 }
 0x788   :  { %v1082_v29 = vpop.eup %1081 }
 0x789   :  { %415 = vrot.lane.b32.xlu0 %v1082_v29, %s1178_s30 }
 0x7fb   :  { %v416_v30 = vpop.permute.xlu0 %415 }
 0x7fc   :  { %v418_v31 = vmul.f32 %v1080_v23, %v416_v30 }
 0x7fe   :  { %v419_v32 = vpack.c.bf16 %v418_v31, %v418_v31 }
 0x800   :  { %421 = vrot.lane.b32.xlu1 %v419_v32, %s1179_s3 }
 0x872   :  { %v422_v33 = vpop.permute.xlu1 %421 }
 0x873   :  { %989 = vmatmul.mubr.msk.bf16.vlgmr.msra.gmra.mrb[8].mxu1 %vm71_vm1, %v422_v33 }
 0x874   :  { %1001 = vmatpush3.bf16.msra.mxu1 %v1255_v8  ;;  %1004 = vmatprep.mubr.msk.bf16.mxu1 %vm1176_vm0, %v1175_v0 }
 0x875   :  { %1002 = vmatprep.subr.bf16.mxu1 %v1175_v0 }
 0x878   :  { %1003 = vmatpush3.bf16.msra.mxu1 %v1259_v13 }
 0x879   :  { %1016 = vmatprep.subr.bf16.mxu1 %v1175_v0 }
 0x946   :  { %v460_v35 = vpop.f32.mrb[8].mxu1 }
 0x947   :  { %v466_v36 = vadd.f32 %v460_v35, %v178_v34  ;;  %v990_v37 = vpop.f32.mrb[9].mxu1 }
 0x948   :  { %v463_v38 = vpop.f32.mrb[10].mxu1  ;;  %v193_v37 = vadd.f32 %v1279_v16, %v1312_v9 }
 0x949   :  { %1083 = vtanh.f32 %v466_v36  ;;  %v991_v39 = vpop.f32.mrb[11].mxu1  ;;  %v888_v41 = vmul.f32 -1.442695, %v466_v36 }
 0x94b   :  { %1085 = vpow2.f32 %v888_v41 }
 0x953   :  { %v1084_v40 = vpop.eup %1083 }
 0x954   :  { %476 = vrot.lane.b32.xlu0 %v1084_v40, %s1178_s30 }
 0x955   :  { %v1086_v42 = vpop.eup %1085 }
 0x956   :  { %v470_v43 = vadd.f32 1.0, %v1086_v42 }
 0x958   :  { %1087 = vrcp.f32 %v470_v43 }
 0x962   :  { %v1088_v44 = vpop.eup %1087 }
 0x963   :  { %v474_v47 = vmul.f32 %v1088_v44, %v412_v28 }
 0x9c6   :  { %v477_v45 = vpop.permute.xlu0 %476 }
 0x9c7   :  { %v479_v46 = vmul.f32 %v1088_v44, %v477_v45 }
 0x9c9   :  { %481 = vrot.lane.b32.xlu1 %v479_v46, %s1179_s3 }
 0xa3b   :  { %v482_v48 = vpop.permute.xlu1 %481 }
 0xa3c   :  { %v484_v49 = vadd.f32 %v482_v48, %v474_v47 }
 0xa3e   :  { %1089 = vtanh.f32 %v484_v49 }
 0xa48   :  { %v1090_v50 = vpop.eup %1089 }
 0xa49   :  { %487 = vrot.lane.b32.xlu0 %v1090_v50, %s1178_s30 }
 0xabb   :  { %v488_v51 = vpop.permute.xlu0 %487 }
 0xabc   :  { %v490_v52 = vmul.f32 %v1088_v44, %v488_v51 }
 0xabe   :  { %v491_v53 = vpack.c.bf16 %v490_v52, %v490_v52 }
 0xac0   :  { %493 = vrot.lane.b32.xlu1 %v491_v53, %s1179_s3 }
 0xb32   :  { %v494_v54 = vpop.permute.xlu1 %493 }
 0xb33   :  { %997 = vmatmul.mubr.msk.bf16.vlgmr.msra.gmra.mrb[12].mxu0 %vm71_vm1, %v494_v54 }
 0xb34   :  { %1009 = vmatpush3.bf16.msra.mxu0 %v1255_v8  ;;  %1012 = vmatprep.mubr.msk.bf16.mxu0 %vm1176_vm0, %v1175_v0 }
 0xb35   :  { %1010 = vmatprep.subr.bf16.mxu0 %v1175_v0 }
 0xb38   :  { %1011 = vmatpush3.bf16.msra.mxu0 %v1259_v13 }
 0xc06   :  { %v532_v56 = vpop.f32.mrb[12].mxu0 }
 0xc07   :  { %v538_v57 = vadd.f32 %v532_v56, %v183_v55  ;;  %v998_v58 = vpop.f32.mrb[13].mxu0  ;;  %v198_v56 = vadd.f32 %v1310_v7, %v1279_v16 }
 0xc08   :  { %v535_v59 = vpop.f32.mrb[14].mxu0 }
 0xc09   :  { %1091 = vtanh.f32 %v538_v57  ;;  %v999_v60 = vpop.f32.mrb[15].mxu0  ;;  %v890_v62 = vmul.f32 -1.442695, %v538_v57 }
 0xc0b   :  { %1093 = vpow2.f32 %v890_v62 }
 0xc13   :  { %v1092_v61 = vpop.eup %1091 }
 0xc14   :  { %548 = vrot.lane.b32.xlu0 %v1092_v61, %s1178_s30 }
 0xc15   :  { %v1094_v63 = vpop.eup %1093 }
 0xc16   :  { %v542_v1 = vadd.f32 1.0, %v1094_v63 }
 0xc18   :  { %1095 = vrcp.f32 %v542_v1 }
 0xc22   :  { %v1096_v2 = vpop.eup %1095 }
 0xc23   :  { %v546_v6 = vmul.f32 %v1096_v2, %v484_v49 }
 0xc86   :  { %v549_v3 = vpop.permute.xlu0 %548 }
 0xc87   :  { %v551_v4 = vmul.f32 %v1096_v2, %v549_v3 }
 0xc89   :  { %553 = vrot.lane.b32.xlu1 %v551_v4, %s1179_s3 }
 0xcfb   :  { %v554_v10 = vpop.permute.xlu1 %553 }
 0xcfc   :  { %v556_v11 = vadd.f32 %v554_v10, %v546_v6 }
 0xcfe   :  { %1097 = vtanh.f32 %v556_v11 }
 0xd08   :  { %v1098_v12 = vpop.eup %1097 }
 0xd09   :  { %559 = vrot.lane.b32.xlu0 %v1098_v12, %s1178_s30  ;;  %v780_v12 = vld [vmem:[%s1401_s4 + $0x8] sm:$0xff] }
 0xd7b   :  { %v560_v14 = vpop.permute.xlu0 %559 }
 0xd7c   :  { %v562_v15 = vmul.f32 %v1096_v2, %v560_v14  ;;  %v781_v14 = vld [vmem:[%s1401_s4 + $0x10] sm:$0xff] }
 0xd7e   :  { %v563_v17 = vpack.c.bf16 %v562_v15, %v562_v15  ;;  %v1180_v15 = vmov 0.0|0.0  }
 0xd7f   :  { %1043 = vmatprep.subr.bf16.mxu0 %v1180_v15 }
 0xd80   :  { %565 = vrot.lane.b32.xlu1 %v563_v17, %s1179_s3 }
 0xdf2   :  { %v566_v18 = vpop.permute.xlu1 %565 }
 0xdf3   :  { %1005 = vmatmul.mubr.msk.bf16.vlgmr.msra.gmra.mrb[12].mxu1 %vm71_vm1, %v566_v18  ;;  %v782_v18 = vld [vmem:[%s1401_s4 + $0x18] sm:$0xff] }
 0xdf4   :  { %1017 = vmatpush3.bf16.msra.mxu1 %v1255_v8  ;;  %1020 = vmatprep.mubr.msk.bf16.mxu1 %vm1176_vm0, %v1175_v0 }
 0xdf5   :  { %1018 = vmatprep.subr.bf16.mxu1 %v1175_v0 }
 0xdf8   :  { %1019 = vmatpush3.bf16.msra.mxu1 %v1259_v13 }
 0xec6   :  { %v604_v20 = vpop.f32.mrb[12].mxu1 }
 0xec7   :  { %v610_v21 = vadd.f32 %v604_v20, %v188_v19  ;;  %v1006_v22 = vpop.f32.mrb[13].mxu1  ;;  %v1047_v19 = vpack.c.bf16 %v782_v18, %v781_v14 }
 0xec8   :  { %v607_v23 = vpop.f32.mrb[14].mxu1 }
 0xec9   :  { %1099 = vtanh.f32 %v610_v21  ;;  %v1007_v24 = vpop.f32.mrb[15].mxu1  ;;  %v892_v8 = vmul.f32 -1.442695, %v610_v21 }
 0xeca   :  { %v897_v24 = vld [vmem:[%s1402_s5] ss:$0 sm:$0xff] }
 0xecb   :  { %1101 = vpow2.f32 %v892_v8 }
 0xed3   :  { %v1100_v25 = vpop.eup %1099 }
 0xed4   :  { %620 = vrot.lane.b32.xlu0 %v1100_v25, %s1178_s30 }
 0xed5   :  { %v1102_v26 = vpop.eup %1101 }
 0xed6   :  { %v614_v27 = vadd.f32 1.0, %v1102_v26 }
 0xed8   :  { %1103 = vrcp.f32 %v614_v27 }
 0xee2   :  { %v1104_v28 = vpop.eup %1103 }
 0xee3   :  { %v618_v5 = vmul.f32 %v1104_v28, %v556_v11  ;;  %v779_v11 = vld [vmem:[%s1401_s4] sm:$0xff] }
 0xee4   :  { %v1044_v17 = vpack.c.bf16 %v780_v12, %v779_v11 }
 0xf46   :  { %v621_v29 = vpop.permute.xlu0 %620 }
 0xf47   :  { %v623_v13 = vmul.f32 %v1104_v28, %v621_v29 }
 0xf49   :  { %625 = vrot.lane.b32.xlu1 %v623_v13, %s1179_s3 }
 0xfbb   :  { %v626_v30 = vpop.permute.xlu1 %625 }
 0xfbc   :  { %v628_v31 = vadd.f32 %v626_v30, %v618_v5 }
 0xfbe   :  { %1105 = vtanh.f32 %v628_v31 }
 0xfc8   :  { %v1106_v32 = vpop.eup %1105 }
 0xfc9   :  { %631 = vrot.lane.b32.xlu0 %v1106_v32, %s1178_s30 }
0x103b   :  { %v632_v33 = vpop.permute.xlu0 %631 }
0x103c   :  { %v634_v34 = vmul.f32 %v1104_v28, %v632_v33 }
0x103e   :  { %v635_v35 = vpack.c.bf16 %v634_v34, %v634_v34 }
0x1040   :  { %637 = vrot.lane.b32.xlu1 %v635_v35, %s1179_s3 }
0x10b2   :  { %v638_v36 = vpop.permute.xlu1 %637 }
0x10b3   :  { %1013 = vmatmul.mubr.msk.bf16.vlgmr.msra.gmra.mrb[16].mxu0 %vm71_vm1, %v638_v36 }
0x10b4   :  { %1032 = vmatprep.mubr.msk.f32.mxu0 %vm1176_vm0, %v1175_v0  ;;  %1045 = vmatpush3.bf16.msra.mxu0 %v1044_v17 }
0x10b5   :  { %1046 = vmatprep.subr.bf16.mxu0 %v1180_v15 }
0x10b8   :  { %1048 = vmatpush3.bf16.msra.mxu0 %v1047_v19 }
0x1186   :  { %v676_v38 = vpop.f32.mrb[16].mxu0 }
0x1187   :  { %v682_v39 = vadd.f32 %v676_v38, %v193_v37  ;;  %v1014_v40 = vpop.f32.mrb[17].mxu0 }
0x1188   :  { %v679_v41 = vpop.f32.mrb[18].mxu0 }
0x1189   :  { %1107 = vtanh.f32 %v682_v39  ;;  %v1015_v42 = vpop.f32.mrb[19].mxu0  ;;  %v894_v44 = vmul.f32 -1.442695, %v682_v39 }
0x118b   :  { %1109 = vpow2.f32 %v894_v44 }
0x1193   :  { %v1108_v43 = vpop.eup %1107 }
0x1194   :  { %692 = vrot.lane.b32.xlu0 %v1108_v43, %s1178_s30 }
0x1195   :  { %v1110_v45 = vpop.eup %1109 }
0x1196   :  { %v686_v46 = vadd.f32 1.0, %v1110_v45 }
0x1198   :  { %1111 = vrcp.f32 %v686_v46 }
0x11a2   :  { %v1112_v47 = vpop.eup %1111 }
0x11a3   :  { %v690_v9 = vmul.f32 %v1112_v47, %v628_v31 }
0x1206   :  { %v693_v48 = vpop.permute.xlu0 %692 }
0x1207   :  { %v695_v0 = vmul.f32 %v1112_v47, %v693_v48 }
0x1209   :  { %697 = vrot.lane.b32.xlu1 %v695_v0, %s1179_s3 }
0x127b   :  { %v698_v49 = vpop.permute.xlu1 %697 }
0x127c   :  { %v700_v50 = vadd.f32 %v698_v49, %v690_v9 }
0x127e   :  { %1113 = vtanh.f32 %v700_v50 }
0x1288   :  { %v1114_v51 = vpop.eup %1113 }
0x1289   :  { %703 = vrot.lane.b32.xlu0 %v1114_v51, %s1178_s30 }
0x12fb   :  { %v704_v52 = vpop.permute.xlu0 %703 }
0x12fc   :  { %v706_v53 = vmul.f32 %v1112_v47, %v704_v52 }
0x12fe   :  { %v707_v54 = vpack.c.bf16 %v706_v53, %v706_v53 }
0x1300   :  { %709 = vrot.lane.b32.xlu1 %v707_v54, %s1179_s3 }
0x1372   :  { %v710_v55 = vpop.permute.xlu1 %709 }
0x1373   :  { %1021 = vmatmul.mubr.msk.bf16.vlgmr.msra.gmra.mrb[16].mxu1 %vm71_vm1, %v710_v55 }
0x1446   :  { %v748_v57 = vpop.f32.mrb[16].mxu1 }
0x1447   :  { %v754_v58 = vadd.f32 %v748_v57, %v198_v56  ;;  %v1022_v59 = vpop.f32.mrb[17].mxu1 }
0x1448   :  { %v751_v60 = vpop.f32.mrb[18].mxu1 }
0x1449   :  { %1115 = vtanh.f32 %v754_v58  ;;  %v1023_v61 = vpop.f32.mrb[19].mxu1  ;;  %v896_v63 = vmul.f32 -1.442695, %v754_v58 }
0x144b   :  { %1117 = vpow2.f32 %v896_v63 }
0x1453   :  { %v1116_v62 = vpop.eup %1115 }
0x1454   :  { %764 = vrot.lane.b32.xlu0 %v1116_v62, %s1178_s30 }
0x1455   :  { %v1118_v1 = vpop.eup %1117 }
0x1456   :  { %v758_v2 = vadd.f32 1.0, %v1118_v1 }
0x1458   :  { %1119 = vrcp.f32 %v758_v2 }
0x1462   :  { %v1120_v3 = vpop.eup %1119 }
0x1463   :  { %v762_v16 = vmul.f32 %v1120_v3, %v700_v50 }
0x14c6   :  { %v765_v4 = vpop.permute.xlu0 %764 }
0x14c7   :  { %v767_v6 = vmul.f32 %v1120_v3, %v765_v4 }
0x14c9   :  { %769 = vrot.lane.b32.xlu1 %v767_v6, %s1179_s3 }
0x153b   :  { %v770_v7 = vpop.permute.xlu1 %769 }
0x153c   :  { %v772_v10 = vadd.f32 %v770_v7, %v762_v16 }
0x153e   :  { %1121 = vtanh.f32 %v772_v10 }
0x1548   :  { %v1122_v20 = vpop.eup %1121 }
0x1549   :  { %775 = vrot.lane.b32.xlu0 %v1122_v20, %s1178_s30 }
0x15bb   :  { %v776_v21 = vpop.permute.xlu0 %775 }
0x15bc   :  { %v778_v22 = vmul.f32 %v1120_v3, %v776_v21 }
0x15be   :  { %791 = vrot.lane.b32.xlu1 %v778_v22, %s1179_s3 }
0x1630   :  { %v792_v23 = vpop.permute.xlu1 %791 }
0x1631   :  { %1033 = vmatmul.mubr.msk.f32.vlgmr.msra.gmra.mrb[20].mxu0 %vm71_vm1, %v792_v23 }
0x1704   :  { %v861_v25 = vpop.f32.mrb[20].mxu0 }
0x1705   :  { %v862_v8 = vadd.f32 %v897_v24, %v861_v25  ;;  %v1034_v26 = vpop.f32.mrb[21].mxu0 }
0x1707   :  { %866 = vst.msk [vmem:[%s1403_s6] sm:$0xff] %vm865_vm2, %v862_v8 }
0x1708   :  { %871 = vsyncpa [#allocation3], 1 }
0x1709   :  { %872 = vsyncpa [#allocation5], 1 }

</bundles_post_ra>
